<compile_context>
chip_gen: v5e
topology: v5e:2x2
jax: 0.10.0
libtpu: 0.0.40
codegen_flags: <defaults>
</compile_context>

<pallas_src>
import functools

import jax
import jax.numpy as jnp
from jax.experimental import pallas as pl
from jax.experimental.pallas import tpu as pltpu


def _relu_kernel(x_ref, o_ref, *, negative_slope):
    x = x_ref[...]
    if negative_slope == 0.0:
        o_ref[...] = jnp.maximum(x, jnp.zeros_like(x))
    elif negative_slope <= 1.0:
        # leaky_relu(x) == max(x, a*x) for 0 <= a <= 1.
        slope = jnp.asarray(negative_slope, dtype=x.dtype)
        o_ref[...] = jnp.maximum(x, slope * x)
    else:
        slope = jnp.asarray(negative_slope, dtype=x.dtype)
        o_ref[...] = jnp.where(x >= 0, x, slope * x)


def _vmem_budget():
    """(block_bytes, vmem_limit_bytes, multi_core) per TPU generation."""
    try:
        vmem_bytes = int(pltpu.get_tpu_info().vmem_capacity_bytes)
    except Exception:
        vmem_bytes = None
    if vmem_bytes is not None and vmem_bytes <= 96 * 1024 * 1024:
        # v7x: 64 MiB VMEM/TC, 2 TCs/chip, ~3.2 TB/s HBM.
        # 8 MiB blocks (in+out double-buffered = 32 MiB) + headroom.
        return 8 * 1024 * 1024, 48 * 1024 * 1024, True
    # v5e / v6e (128 MiB VMEM, 1 TC) or unknown: 8 MiB blocks are already
    # well past the tiling knee; raise the scoped limit explicitly.
    return 8 * 1024 * 1024, 64 * 1024 * 1024, False


def _pick_lane_width(total):
    """Largest lane-dense column width (multiple of 128) dividing `total`."""
    for c in (2048, 1024, 512, 256, 128):
        if total % c == 0:
            return c
    return None


def _sublane(dtype):
    """Dtype-native sublane tile: 8 for 4-byte, 16 for 2-byte, 32 for 1-byte."""
    itemsize = jnp.dtype(dtype).itemsize
    return max(8, 32 // max(1, itemsize))


def _pick_row_tile(R, C, itemsize, block_bytes, sublane):
    tr = block_bytes // (C * itemsize)
    tr = max(sublane, (tr // sublane) * sublane)
    if R <= tr:
        return R  # single full-extent block (always a legal block shape)
    if R % tr != 0:
        # Prefer an even division so the last block is not a masked partial
        # store, but never shrink the block below half the target size.
        t = tr
        while t >= max(sublane, tr // 2):
            if R % t == 0:
                return t
            t -= sublane
    return tr


def _relu_2d(x2d, negative_slope, block_bytes, vmem_limit, multi_core):
    """Run the elementwise kernel over a 2D array whose last dim % 128 == 0."""
    R, C = x2d.shape
    itemsize = jnp.dtype(x2d.dtype).itemsize
    sublane = _sublane(x2d.dtype)
    tr = _pick_row_tile(R, C, itemsize, block_bytes, sublane)
    grid_r = pl.cdiv(R, tr)

    kernel = functools.partial(_relu_kernel, negative_slope=negative_slope)
    cost = pl.CostEstimate(
        flops=R * C, transcendentals=0, bytes_accessed=2 * R * C * itemsize)

    def run(dim_sem):
        return pl.pallas_call(
            kernel,
            out_shape=jax.ShapeDtypeStruct((R, C), x2d.dtype),
            grid=(grid_r,),
            in_specs=[pl.BlockSpec((tr, C), lambda i: (i, 0))],
            out_specs=pl.BlockSpec((tr, C), lambda i: (i, 0)),
            input_output_aliases={0: 0},  # mirror inplace=True
            cost_estimate=cost,
            compiler_params=pltpu.CompilerParams(
                dimension_semantics=(dim_sem,),
                vmem_limit_bytes=vmem_limit,
            ),
        )(x2d)

    if multi_core and grid_r > 1:
        # Shard the row range across both v7x TensorCores (pure DMA-bound op:
        # up to ~2x). Fall back if this lowering is rejected.
        try:
            return run(pltpu.CORE_PARALLEL)
        except Exception:
            pass
    return run(pltpu.ARBITRARY)


def _leaky_jnp(x, negative_slope):
    if negative_slope == 0.0:
        return jnp.maximum(x, jnp.zeros_like(x))
    slope = jnp.asarray(negative_slope, dtype=x.dtype)
    return jnp.where(x >= 0, x, slope * x)


def pallas_relu(x, relu: float = 0.0):
    """Elementwise (Leaky)ReLU of an arbitrary-shape tensor via Pallas."""
    assert relu >= 0, "module only defines behavior for relu >= 0"
    negative_slope = float(relu)
    orig_shape = x.shape
    total = 1
    for d in orig_shape:
        total *= d
    if total == 0:
        return x

    block_bytes, vmem_limit, multi_core = _vmem_budget()

    C = _pick_lane_width(total)
    if C is not None:
        # Fast path: free contiguous reshape to a lane-dense 2D view.
        x2d = x.reshape(total // C, C)
        out2d = _relu_2d(x2d, negative_slope, block_bytes, vmem_limit,
                         multi_core)
        return out2d.reshape(orig_shape)

    # Rare fallback (total not a multiple of 128): run the fast path on the
    # largest multiple-of-128 prefix, handle the <128-element tail in jnp,
    # and stitch. No full-tensor pad/slice round trip.
    x_flat = x.reshape(-1)
    head = (total // 128) * 128
    if head == 0:
        return _leaky_jnp(x, negative_slope)
    head_out = _relu_2d(x_flat[:head].reshape(head // 128, 128),
                        negative_slope, block_bytes, vmem_limit, multi_core)
    tail_out = _leaky_jnp(x_flat[head:], negative_slope)
    return jnp.concatenate([head_out.reshape(-1), tail_out]).reshape(orig_shape)


class ReLUPallas:
    """Mirror of the PyTorch ReLU wrapper module (relu > 0 -> LeakyReLU)."""

    # TODO(synk): PyTorch's inplace=True has no strict JAX equivalent
    # (functional semantics); input_output_aliases + buffer donation at the
    # jit boundary is the closest analogue. Output values are identical.

    def __init__(self, relu):
        if relu < 0:
            raise ValueError("relu must be >= 0, matching the PyTorch module")
        self.relu = float(relu)

    def __call__(self, x):
        return pallas_relu(x, self.relu)


if __name__ == "__main__":
    key = jax.random.PRNGKey(0)
    # NCHW input, small shapes: batch=2, channels=4, spatial=16x16
    x = jax.random.normal(key, (2, 4, 16, 16), dtype=jnp.float32)

    # Case 1: relu == 0  ->  standard ReLU
    mod0 = ReLUPallas(0.0)
    y0 = jax.block_until_ready(mod0(x))
    ref0 = jnp.maximum(x, 0.0)
    assert y0.shape == x.shape and y0.dtype == x.dtype
    assert jnp.allclose(y0, ref0, atol=1e-6)

    # Case 2: relu > 0  ->  LeakyReLU with negative_slope = 0.1
    mod1 = ReLUPallas(0.1)
    y1 = jax.block_until_ready(mod1(x))
    ref1 = jnp.where(x >= 0, x, 0.1 * x)
    assert jnp.allclose(y1, ref1, atol=1e-6)

    # Exercise the non-multiple-of-128 fallback path too (prefix + jnp tail).
    x_odd = jax.random.normal(key, (3, 5, 7), dtype=jnp.float32)
    y_odd = jax.block_until_ready(pallas_relu(x_odd, 0.1))
    ref_odd = jnp.where(x_odd >= 0, x_odd, 0.1 * x_odd)
    assert jnp.allclose(y_odd, ref_odd, atol=1e-6)

    print("KERNEL_OK")
</pallas_src>

<mosaic_0001>
module attributes {stable_mosaic.version = 11 : i64} {
  func.func @_relu_kernel(%arg0: i32, %arg1: memref<1x2048xf32, #tpu.memory_space<vmem>>, %arg2: memref<1x2048xf32, #tpu.memory_space<vmem>>) attributes {dimension_semantics = [#tpu.dimension_semantics<arbitrary>], iteration_bounds = array<i64: 1>, scalar_prefetch = 0 : i64, scratch_operands = 0 : i64, tpu.core_type = #tpu.core_type<tc>, window_params = [{transform_indices = @transform_0, window_bounds = array<i64: 1, 2048>}, {transform_indices = @transform_1, window_bounds = array<i64: 1, 2048>}]} {
    %c0 = arith.constant 0 : index
    %c0_0 = arith.constant 0 : index
    %0 = vector.load %arg1[%c0, %c0_0] : memref<1x2048xf32, #tpu.memory_space<vmem>>, vector<1x2048xf32>
    %cst = arith.constant 0.000000e+00 : f32
    %1 = vector.broadcast %cst : f32 to vector<1x2048xf32>
    %2 = arith.maximumf %0, %1 : vector<1x2048xf32>
    %c0_1 = arith.constant 0 : index
    %c0_2 = arith.constant 0 : index
    %3 = vector.load %arg2[%c0_1, %c0_2] : memref<1x2048xf32, #tpu.memory_space<vmem>>, vector<1x2048xf32>
    tpu.vector_store %arg2[%c0_1, %c0_2], %2 {strides = array<i32>} : memref<1x2048xf32, #tpu.memory_space<vmem>>, vector<1x2048xf32>,
    return
  }
  func.func @transform_0(%arg0: i32) -> (i32, i32) {
    %c0_i32 = arith.constant 0 : i32
    %c0_i32_0 = arith.constant 0 : i32
    return %arg0, %c0_i32 : i32, i32
  }
  func.func @transform_1(%arg0: i32) -> (i32, i32) {
    %c0_i32 = arith.constant 0 : i32
    %c0_i32_0 = arith.constant 0 : i32
    return %arg0, %c0_i32 : i32, i32
  }
}

</mosaic_0001>

<bundles_post_ra>
// kernel: tpu_custom_call.1
= control target key start
LH: loop header
LB: loop body
LE: loop exit
PB: predicated region body
PF: predicated region fallthrough
CT: control target
= control target key end

     0   :  { %6 = vsyncpa [#allocation3], 0  ;;  %s118_s0 = inlined_call_operand.hbm [shape: f32[1,2048], index: 0, kind: input, shape index: {}, may-alias: {0,1}]   ;;  %s119_s1 = inlined_call_operand.hbm [shape: f32[1,2048], index: 1, kind: output, shape index: {}, may-alias: {0,1}]  }
   0x1   :  { %7 = vsyncpa [#allocation4], 0  ;;  %s13_s8 = sshll.u32 %s118_s0, 4  ;;  %s100_s9 = smov [#allocation2]   ;;  %s14_s8 = int_to_ptr.hbm [resolvable:$true] %s13_s8 }
   0x2   :  { %s15_s10 = sshll.u32 %s100_s9, 4  ;;  %s16_s10 = int_to_ptr.vmem [resolvable:$true] %s15_s10 }
   0x3   :  { %18 = dma.hbm_to_vmem [thread:$0]  %s14_s8, 256, %s16_s10, [#allocation3]  }
   0x4   :  { %96 = dma.done.wait [#allocation3], 256  }
   0x5   :  { %97 = vsyncadd [#allocation3], 4294967040  ;;  %s101_s11 = smov [#allocation5]   ;;  %s36_s15 = sshll.u32 %s119_s1, 4  ;;  %v23_v0 = vld [vmem:[#allocation2] sm:$0xff]  ;;  %v24_v1 = vld [vmem:[#allocation2 + $0x8] sm:$0xff]  ;;  %s37_s15 = int_to_ptr.hbm [resolvable:$true] %s36_s15 }
   0x6   :  { %s34_s12 = sshll.u32 %s101_s11, 4  ;;  %v25_v2 = vmax.f32 %v23_v0, 0.0  ;;  %v26_v3 = vmax.f32 %v24_v1, 0.0  ;;  %s35_s12 = int_to_ptr.vmem [resolvable:$true] %s34_s12 }
   0x8   :  { %27 = vst [vmem:[#allocation5] sm:$0xff] %v25_v2 }
   0x9   :  { %28 = vst [vmem:[#allocation5 + $0x8] sm:$0xff] %v26_v3 }
   0xa   :  { %39 = dma.vmem_to_hbm [thread:$0]  %s35_s12, 256, %s37_s15, [#allocation4]  }
   0xb   :  { %98 = dma.done.wait [#allocation4], 256  }
   0xc   :  { %99 = vsyncadd [#allocation4], 4294967040 }
   0xd   :  { %44 = vsyncpa [#allocation3], 1 }
   0xe   :  { %45 = vsyncpa [#allocation4], 1 }

</bundles_post_ra>
